<compile_context>
chip_gen: v7x
topology: tpu7x:2x2x1
jax: 0.10.0
libtpu: 0.0.40
codegen_flags: <defaults>
</compile_context>

<pallas_src>
import functools

import jax
import jax.numpy as jnp
import numpy as np
from jax.experimental import pallas as pl
from jax.experimental.pallas import tpu as pltpu

# Pixel (lane-axis) tile; always a multiple of 128.  Shrunk automatically if
# the double-buffered working set would not fit the per-chip VMEM budget.
TILE_P = 1024


def _vmem_budget_bytes():
    """~0.75x of per-core VMEM capacity (96 MiB v5e/v6e, 48 MiB v7x)."""
    try:
        info = pltpu.get_tpu_info()
        cap = getattr(info, "vmem_capacity_bytes", None)
        if cap:
            return int(cap) * 3 // 4
    except Exception:
        pass
    return 48 * 1024 * 1024  # conservative fallback (fits every generation)


# ---------------------------------------------------------------------------
# Pallas kernel: fused complex-as-2x2-block 1x1 conv + ReLU, channel-major.
#   y_cat = relu(w_cat @ x_cat),  x_cat (2Cin, TP), w_cat (2Cout, 2Cin),
#   y_cat (2Cout, TP); first Cout rows = real plane, last Cout rows = imag.
# The pixel axis TP sits on lanes -> lane-dense loads and stores.
# ---------------------------------------------------------------------------
def _fu_conv_kernel(x_ref, w_ref, o_ref):
    y = jnp.dot(w_ref[...], x_ref[...], preferred_element_type=jnp.float32)
    o_ref[...] = jnp.maximum(y, 0.0).astype(o_ref.dtype)


def _fu_conv(x_cat, w_cat, *, tile_p=TILE_P):
    """x_cat: (B, 2Cin, P_pad) [f32 or bf16], w_cat: (2Cout, 2Cin).

    Returns y_cat: (B, 2Cout, P_pad) f32 = relu(w_cat @ x_cat) per batch.
    P_pad must be a multiple of 128.
    """
    B, Cin2, P_pad = x_cat.shape
    Cout2 = Cin2 if w_cat is None else w_cat.shape[0]
    in_itemsize = x_cat.dtype.itemsize
    out_itemsize = 4  # f32 output

    vmem_budget = _vmem_budget_bytes()

    # Pixel tile: full extent (already a 128-multiple) when small, else tile_p,
    # shrunk until the double-buffered working set fits ~half the VMEM budget.
    tp = P_pad if P_pad <= tile_p else tile_p

    def working_set(t):
        return (2 * t * (Cin2 * in_itemsize + Cout2 * out_itemsize)
                + 2 * Cout2 * Cin2 * in_itemsize)

    while tp > 128 and working_set(tp) > vmem_budget // 2:
        tp = max(128, ((tp // 2) + 127) // 128 * 128)

    num_p = pl.cdiv(P_pad, tp)

    # Make sure there are >= 2 grid steps when possible so both of v7x's
    # TensorCores (and megacore on v5e/v6e) get work.
    if B * num_p < 2 and tp >= 256:
        tp = ((tp // 2) + 127) // 128 * 128
        num_p = pl.cdiv(P_pad, tp)

    grid = (B, num_p)

    x_spec = pl.BlockSpec((None, Cin2, tp), lambda b, p: (b, 0, p))
    w_spec = pl.BlockSpec((Cout2, Cin2), lambda b, p: (0, 0))
    o_spec = pl.BlockSpec((None, Cout2, tp), lambda b, p: (b, 0, p))

    flops = 2 * B * P_pad * Cin2 * Cout2
    bytes_accessed = (B * Cin2 * P_pad * in_itemsize
                      + B * Cout2 * P_pad * out_itemsize
                      + Cout2 * Cin2 * in_itemsize)

    return pl.pallas_call(
        _fu_conv_kernel,
        out_shape=jax.ShapeDtypeStruct((B, Cout2, P_pad), jnp.float32),
        grid_spec=pltpu.PrefetchScalarGridSpec(
            num_scalar_prefetch=0,
            grid=grid,
            in_specs=[x_spec, w_spec],
            out_specs=o_spec,
        ),
        compiler_params=pltpu.CompilerParams(
            dimension_semantics=("parallel", "parallel"),
            vmem_limit_bytes=vmem_budget,
        ),
        cost_estimate=pl.CostEstimate(
            flops=flops, transcendentals=0, bytes_accessed=bytes_accessed),
    )(x_cat, w_cat)


# ---------------------------------------------------------------------------
# FourierUnit.forward (groups=1, no SE, no spectral pos enc, no resize, 2-D)
# ---------------------------------------------------------------------------
def fourier_unit(x, w_conv, *, tile_p=TILE_P, compute_dtype=jnp.float32):
    """x: (B, Cin, H, W).  w_conv: (2*Cin, 2*Cout) matmul-form 1x1-conv weight,
    i.e. torch_conv.weight[:, :, 0, 0].T.  compute_dtype: f32, or bf16 to halve
    HBM read traffic (recommended on v6e/v7x); FFTs and accumulation stay f32.
    """
    B, Cin, H, W = x.shape
    Cin2, Cout2 = w_conv.shape
    assert Cin2 == 2 * Cin
    Cout = Cout2 // 2

    ffted = jnp.fft.rfftn(x.astype(jnp.float32), axes=(-2, -1), norm="ortho")
    Wr = ffted.shape[-1]
    P = H * Wr
    P_pad = ((P + 127) // 128) * 128

    # Channel-major real/imag planes, concatenated along channels -> (B,2Cin,P).
    # Pure reshapes (no HxWr transpose); padding the pixel axis to a 128
    # multiple keeps every kernel store lane-dense.
    x_cat = jnp.concatenate([jnp.real(ffted), jnp.imag(ffted)], axis=1)
    x_cat = x_cat.reshape(B, 2 * Cin, P)
    if P_pad != P:
        x_cat = jnp.pad(x_cat, ((0, 0), (0, 0), (0, P_pad - P)))
    x_cat = x_cat.astype(compute_dtype)

    # Fold the PyTorch real/imag channel interleave (k = 2*cin + pin,
    # j = 2*cout + pout) into a single fused weight:
    #   w_cat[pout*Cout + cout, pin*Cin + cin] = w_conv[2*cin + pin, 2*cout + pout]
    # giving the 2x2 block matrix [[W_rr, W_ri], [W_ir, W_ii]].
    w4 = w_conv.reshape(Cin, 2, Cout, 2)
    w_cat = jnp.transpose(w4, (3, 2, 1, 0)).reshape(2 * Cout, 2 * Cin)
    w_cat = w_cat.astype(compute_dtype)

    y_cat = _fu_conv(x_cat, w_cat, tile_p=tile_p)          # (B, 2Cout, P_pad) f32

    yr = y_cat[:, :Cout, :P].reshape(B, Cout, H, Wr)
    yi = y_cat[:, Cout:, :P].reshape(B, Cout, H, Wr)
    yc = jax.lax.complex(yr, yi)
    out = jnp.fft.irfftn(yc, s=(H, W), axes=(-2, -1), norm="ortho")
    return out.astype(x.dtype)


# ---------------------------------------------------------------------------
# Pure-JAX reference mirroring the PyTorch FourierUnit exactly (no Pallas)
# ---------------------------------------------------------------------------
def _ref_fourier_unit(x, w_conv):
    B, C, H, W = x.shape
    ff = jnp.fft.rfftn(x, axes=(-2, -1), norm="ortho")
    Wr = ff.shape[-1]
    f = jnp.stack([ff.real, ff.imag], axis=-1)                    # (B,C,H,Wr,2)
    f = jnp.transpose(f, (0, 1, 4, 2, 3)).reshape(B, 2 * C, H, Wr)
    y = jnp.einsum("bchw,cd->bdhw", f, w_conv)                    # 1x1 conv
    y = jnp.maximum(y, 0.0)
    Cout = w_conv.shape[1] // 2
    y = y.reshape(B, Cout, 2, H, Wr).transpose(0, 1, 3, 4, 2)
    return jnp.fft.irfftn(y[..., 0] + 1j * y[..., 1],
                          s=(H, W), axes=(-2, -1), norm="ortho")


# ---------------------------------------------------------------------------
if __name__ == "__main__":
    B, C, H, W = 2, 4, 16, 16          # FourierUnit(in_channels=4, out_channels=4)

    key = jax.random.PRNGKey(0)
    kx, kw = jax.random.split(key)
    x = jax.random.normal(kx, (B, C, H, W), jnp.float32)
    # matmul-form conv weight (= torch conv weight[:, :, 0, 0].T): (2C, 2C)
    w_conv = jax.random.normal(kw, (2 * C, 2 * C), jnp.float32) * (2.0 / (2 * C)) ** 0.5

    ref = _ref_fourier_unit(x, w_conv)

    # f32 path: exact match to the reference.
    fwd_f32 = jax.jit(functools.partial(fourier_unit, compute_dtype=jnp.float32))
    out_f32 = jax.block_until_ready(fwd_f32(x, w_conv))
    np.testing.assert_allclose(np.asarray(out_f32), np.asarray(ref),
                               rtol=1e-4, atol=1e-4)
    assert out_f32.shape == (B, C, H, W)

    # bf16-activation path (bandwidth-optimized, v6e/v7x): looser tolerance.
    fwd_bf16 = jax.jit(functools.partial(fourier_unit, compute_dtype=jnp.bfloat16))
    out_bf16 = jax.block_until_ready(fwd_bf16(x, w_conv))
    np.testing.assert_allclose(np.asarray(out_bf16), np.asarray(ref),
                               rtol=5e-2, atol=5e-2)

    print("KERNEL_OK")
</pallas_src>

<mosaic_0001>
module attributes {stable_mosaic.version = 11 : i64} {
  func.func @_fu_conv_kernel(%arg0: i32, %arg1: i32, %arg2: memref<1x8x256xf32, #tpu.memory_space<vmem>>, %arg3: memref<8x8xf32, #tpu.memory_space<vmem>>, %arg4: memref<1x8x256xf32, #tpu.memory_space<vmem>>) attributes {dimension_semantics = [#tpu.dimension_semantics<parallel>, #tpu.dimension_semantics<parallel>], iteration_bounds = array<i64: 2, 1>, scalar_prefetch = 0 : i64, scratch_operands = 0 : i64, tpu.core_type = #tpu.core_type<tc>, window_params = [{transform_indices = @transform_0, window_bounds = array<i64: 1, 8, 256>}, {pipeline_mode = #tpu.pipeline_mode<synchronous>, transform_indices = @transform_1, window_bounds = array<i64: 8, 8>}, {transform_indices = @transform_2, window_bounds = array<i64: 1, 8, 256>}]} {
    %c0 = arith.constant 0 : index
    %c0_0 = arith.constant 0 : index
    %0 = vector.load %arg3[%c0, %c0_0] : memref<8x8xf32, #tpu.memory_space<vmem>>, vector<8x8xf32>
    %c0_1 = arith.constant 0 : index
    %c0_2 = arith.constant 0 : index
    %c0_3 = arith.constant 0 : index
    %1 = vector.load %arg2[%c0_1, %c0_2, %c0_3] : memref<1x8x256xf32, #tpu.memory_space<vmem>>, vector<1x8x256xf32>
    %2 = vector.shape_cast %1 : vector<1x8x256xf32> to vector<8x256xf32>
    %cst = arith.constant dense<0.000000e+00> : vector<8x256xf32>
    %3 = tpu.matmul %0, %2, %cst {dimension_numbers = #tpu.dot_dimension_numbers<[1], [0], [0], [1], [0, 0, 1, 1], [], []>} : vector<8x8xf32>, vector<8x256xf32>, vector<8x256xf32> -> vector<8x256xf32>
    %cst_4 = arith.constant 0.000000e+00 : f32
    %4 = vector.broadcast %cst_4 : f32 to vector<8x256xf32>
    %5 = arith.maximumf %3, %4 : vector<8x256xf32>
    %c0_5 = arith.constant 0 : index
    %c0_6 = arith.constant 0 : index
    %c0_7 = arith.constant 0 : index
    %6 = vector.load %arg4[%c0_5, %c0_6, %c0_7] : memref<1x8x256xf32, #tpu.memory_space<vmem>>, vector<1x8x256xf32>
    %7 = vector.shape_cast %6 : vector<1x8x256xf32> to vector<8x256xf32>
    %8 = vector.shape_cast %5 : vector<8x256xf32> to vector<1x8x256xf32>
    tpu.vector_store %arg4[%c0_5, %c0_6, %c0_7], %8 {strides = array<i32>} : memref<1x8x256xf32, #tpu.memory_space<vmem>>, vector<1x8x256xf32>,
    return
  }
  func.func @transform_0(%arg0: i32, %arg1: i32) -> (i32, i32, i32) {
    %c0_i32 = arith.constant 0 : i32
    %c0_i32_0 = arith.constant 0 : i32
    return %arg0, %c0_i32, %arg1 : i32, i32, i32
  }
  func.func @transform_1(%arg0: i32, %arg1: i32) -> (i32, i32) {
    %c0_i32 = arith.constant 0 : i32
    %c0_i32_0 = arith.constant 0 : i32
    %c0_i32_1 = arith.constant 0 : i32
    return %c0_i32, %c0_i32_0 : i32, i32
  }
  func.func @transform_2(%arg0: i32, %arg1: i32) -> (i32, i32, i32) {
    %c0_i32 = arith.constant 0 : i32
    %c0_i32_0 = arith.constant 0 : i32
    return %arg0, %c0_i32, %arg1 : i32, i32, i32
  }
}

</mosaic_0001>

<bundles_post_ra>
// kernel: reverse.0
= control target key start
LH: loop header
LB: loop body
LE: loop exit
PB: predicated region body
PF: predicated region fallthrough
CT: control target
= control target key end

     0   :  { %v71_v3 = vlaneseq  ;;  %v64_v9 = vld [vmem:[#allocation0 + $0x7] ss:$-1 sm:$0xff]  ;;  %v78_v12 = vld [vmem:[#allocation0 + $0x17] ss:$-1 sm:$0xff]  ;;  %s329_s0 = inlined_call_operand.vmem [shape: f32[2,4,16,7], index: 0, kind: input, shape index: {}]   ;;  %s330_s1 = inlined_call_operand.vmem [shape: f32[2,4,16,7], index: 1, kind: output, shape index: {}]  }
   0x1   :  { %v44_v0 = vld [vmem:[%s329_s0] sm:$0xff]  ;;  %v46_v1 = vld [vmem:[%s329_s0 + $0x8] sm:$0xff]  ;;  %v48_v2 = vld [vmem:[%s329_s0 + $0x10] sm:$0xff]  ;;  %v65_v10 = vrot.slane %v64_v9, 1  ;;  %v79_v14 = vrot.slane %v78_v12, 1 }
   0x2   :  { %45 = vst [vmem:[#allocation0 + $0x8] sm:$0xff] %v44_v0  ;;  %47 = vst [vmem:[#allocation0 + $0x18] sm:$0xff] %v46_v1  ;;  %v50_v4 = vld [vmem:[%s329_s0 + $0x18] sm:$0xff]  ;;  %v52_v5 = vld [vmem:[%s329_s0 + $0x20] sm:$0xff]  ;;  %v72_v11 = vshrl.u32 %v71_v3, 7 }
   0x3   :  { %49 = vst [vmem:[#allocation0 + $0x28] sm:$0xff] %v48_v2  ;;  %v54_v6 = vld [vmem:[%s329_s0 + $0x28] sm:$0xff]  ;;  %51 = vst [vmem:[#allocation0 + $0x38] sm:$0xff] %v50_v4  ;;  %v56_v7 = vld [vmem:[%s329_s0 + $0x30] sm:$0xff] }
   0x4   :  { %53 = vst [vmem:[#allocation0 + $0x48] sm:$0xff] %v52_v5  ;;  %55 = vst [vmem:[#allocation0 + $0x58] sm:$0xff] %v54_v6  ;;  %v58_v8 = vld [vmem:[%s329_s0 + $0x38] sm:$0xff]  ;;  %v92_v13 = vld [vmem:[#allocation0 + $0x27] ss:$-1 sm:$0xff]  ;;  %vm73_vm0 = vcmp.lt.s32.totalorder %v72_v11, 7 }
   0x5   :  { %57 = vst [vmem:[#allocation0 + $0x68] sm:$0xff] %v56_v7  ;;  %59 = vst [vmem:[#allocation0 + $0x78] sm:$0xff] %v58_v8  ;;  %v93_v15 = vrot.slane %v92_v13, 1  ;;  %v106_v16 = vld [vmem:[#allocation0 + $0x37] ss:$-1 sm:$0xff] }
   0x6   :  { %66 = vst [vmem:[#allocation1] sm:$0xff] %v65_v10  ;;  %v107_v17 = vrot.slane %v106_v16, 1  ;;  %v120_v18 = vld [vmem:[#allocation0 + $0x47] ss:$-1 sm:$0xff]  ;;  %v134_v19 = vld [vmem:[#allocation0 + $0x57] ss:$-1 sm:$0xff] }
   0x7   :  { %80 = vst [vmem:[#allocation1 + $0x8] sm:$0xff] %v79_v14  ;;  %94 = vst [vmem:[#allocation1 + $0x10] sm:$0xff] %v93_v15  ;;  %v121_v20 = vrot.slane %v120_v18, 1  ;;  %v135_v21 = vrot.slane %v134_v19, 1  ;;  %v148_v22 = vld [vmem:[#allocation0 + $0x67] ss:$-1 sm:$0xff] }
   0x8   :  { %v162_v23 = vld [vmem:[#allocation0 + $0x77] ss:$-1 sm:$0xff]  ;;  %108 = vst [vmem:[#allocation1 + $0x18] sm:$0xff] %v107_v17  ;;  %v149_v24 = vrot.slane %v148_v22, 1 }
   0x9   :  { %v163_v25 = vrot.slane %v162_v23, 1  ;;  %v69_v26 = vld [vmem:[#allocation0 + $0xf] ss:$-1 sm:$0xff]  ;;  %v83_v27 = vld [vmem:[#allocation0 + $0x1f] ss:$-1 sm:$0xff]  ;;  %122 = vst [vmem:[#allocation1 + $0x20] sm:$0xff] %v121_v20 }
   0xa   :  { %v97_v28 = vld [vmem:[#allocation0 + $0x2f] ss:$-1 sm:$0xff]  ;;  %136 = vst [vmem:[#allocation1 + $0x28] sm:$0xff] %v135_v21  ;;  %v70_v29 = vrot.slane %v69_v26, 1  ;;  %v84_v30 = vrot.slane %v83_v27, 1  ;;  %150 = vst [vmem:[#allocation1 + $0x30] sm:$0xff] %v149_v24 }
   0xb   :  { %v98_v31 = vrot.slane %v97_v28, 1  ;;  %v111_v32 = vld [vmem:[#allocation0 + $0x3f] ss:$-1 sm:$0xff]  ;;  %164 = vst [vmem:[#allocation1 + $0x38] sm:$0xff] %v163_v25  ;;  %v125_v34 = vld [vmem:[#allocation0 + $0x4f] ss:$-1 sm:$0xff] }
   0xc   :  { %v112_v33 = vrot.slane %v111_v32, 1  ;;  %v139_v35 = vld [vmem:[#allocation0 + $0x5f] ss:$-1 sm:$0xff]  ;;  %74 = vst.msk [vmem:[#allocation1] sm:$0xff] %vm73_vm0, %v70_v29  ;;  %88 = vst.msk [vmem:[#allocation1 + $0x8] sm:$0xff] %vm73_vm0, %v84_v30  ;;  %v126_v36 = vrot.slane %v125_v34, 1 }
   0xd   :  { %102 = vst.msk [vmem:[#allocation1 + $0x10] sm:$0xff] %vm73_vm0, %v98_v31  ;;  %v140_v37 = vrot.slane %v139_v35, 1  ;;  %v153_v38 = vld [vmem:[#allocation0 + $0x6f] ss:$-1 sm:$0xff]  ;;  %v167_v39 = vld [vmem:[#allocation0 + $0x7f] ss:$-1 sm:$0xff] }
   0xe   :  { %116 = vst.msk [vmem:[#allocation1 + $0x18] sm:$0xff] %vm73_vm0, %v112_v33  ;;  %v154_v40 = vrot.slane %v153_v38, 1  ;;  %v168_v41 = vrot.slane %v167_v39, 1  ;;  %130 = vst.msk [vmem:[#allocation1 + $0x20] sm:$0xff] %vm73_vm0, %v126_v36 }
   0xf   :  { %144 = vst.msk [vmem:[#allocation1 + $0x28] sm:$0xff] %vm73_vm0, %v140_v37 }
  0x10   :  { %158 = vst.msk [vmem:[#allocation1 + $0x30] sm:$0xff] %vm73_vm0, %v154_v40  ;;  %172 = vst.msk [vmem:[#allocation1 + $0x38] sm:$0xff] %vm73_vm0, %v168_v41 }
  0x13   :  { %v214_v42 = vld [vmem:[#allocation1] sm:$0xff]  ;;  %v216_v43 = vld [vmem:[#allocation1 + $0x8] sm:$0xff] }
  0x14   :  { %v218_v44 = vld [vmem:[#allocation1 + $0x10] sm:$0xff]  ;;  %215 = vst [vmem:[%s330_s1] sm:$0xff] %v214_v42  ;;  %217 = vst [vmem:[%s330_s1 + $0x8] sm:$0xff] %v216_v43 }
  0x15   :  { %219 = vst [vmem:[%s330_s1 + $0x10] sm:$0xff] %v218_v44  ;;  %v220_v45 = vld [vmem:[#allocation1 + $0x18] sm:$0xff]  ;;  %v222_v46 = vld [vmem:[#allocation1 + $0x20] sm:$0xff] }
  0x16   :  { %221 = vst [vmem:[%s330_s1 + $0x18] sm:$0xff] %v220_v45  ;;  %v224_v47 = vld [vmem:[#allocation1 + $0x28] sm:$0xff]  ;;  %223 = vst [vmem:[%s330_s1 + $0x20] sm:$0xff] %v222_v46 }
  0x17   :  { %225 = vst [vmem:[%s330_s1 + $0x28] sm:$0xff] %v224_v47  ;;  %v226_v48 = vld [vmem:[#allocation1 + $0x30] sm:$0xff]  ;;  %v228_v49 = vld [vmem:[#allocation1 + $0x38] sm:$0xff] }
  0x18   :  { %227 = vst [vmem:[%s330_s1 + $0x30] sm:$0xff] %v226_v48  ;;  %229 = vst [vmem:[%s330_s1 + $0x38] sm:$0xff] %v228_v49 }

// kernel: fourier_unit.1
= control target key start
LH: loop header
LB: loop body
LE: loop exit
PB: predicated region body
PF: predicated region fallthrough
CT: control target
= control target key end

     0   :  { %s431_s9 = smov 0   ;;  %s433_s10 = smov 0   ;;  %s464_s0 = inlined_call_operand.vmem [shape: f32[2,8,256], index: 0, kind: input, shape index: {}]   ;;  %s465_s1 = inlined_call_operand.vmem [shape: f32[8,8], index: 1, kind: input, shape index: {}]   ;;  %s466_s2 = inlined_call_operand.vmem [shape: f32[2,8,256], index: 2, kind: output, shape index: {}]  }
   0x1   :  { %s435_s11 = smov 0  }
   0x2 LB: > { %s24_s12 = sadd.s32 1, %s409_s10  ;;  %p356_p0 = scmp.ge.s32.totalorder %s413_s11, 1  ;;  %s413_s11 = sphi %s435_s11, %s12_s11   ;;  %s409_s10 = sphi %s433_s10, %s468_s10   ;;  %s405_s9 = sphi %s431_s9, %s467_s9  }
   0x3   : > { %p26_p1 = scmp.ge.s32.totalorder %s24_s12, 2  ;;  %p133_p2 = scmp.lt.s32.totalorder %s413_s11, 3 }
   0x5   : > { %s470_s12 = smov (%p26_p1, %s24_s12), 0  ;;  %p134_p3 = pnand %p356_p0, %p133_p2 }
   0x6   : > { %p164_p4 = scmp.lt.s32.totalorder (!%p134_p3), %s405_s9, 1  ;;  %v415_v0 = vmov (!%p134_p3), 0.0   ;;  %v183_v3 = vld [vmem:[%s465_s1] sm:$0xff] (!%p134_p3)  ;;  %vm186_vm0 = vcmask (!%p134_p3), 64512  }
   0x7   : > { %137 = sbr.rel (%p134_p3) target bundleno = 236 (0xec), region = 28  ;;  %254 = vmatprep.mubr.f32.mxu0 (!%p134_p3), %v415_v0 }
   0xe   : > { %s472_s9 = smov (!%p164_p4, %s405_s9), 1 }
   0xf   : > { %s364_s13 = sshll.u32 %s472_s9, 4 }
  0x10   : > { %s171_s16 = scalar_lea.vmem %s464_s0, %s364_s13  ;;  %s181_s21 = scalar_lea.vmem %s466_s2, %s364_s13 }
  0x11   : > { %v185_v1 = vld [vmem:[%s171_s16 + $0x8] sm:$0xff]  ;;  %v184_v2 = vld [vmem:[%s171_s16] sm:$0xff] }
  0x12   : > { %190 = vmatprep.subr.mxu0 %v185_v1 }
  0x13   : > { %191 = vmatpush1.msra.mxu0 %v184_v2 }
  0x14   : > { %361 = vmatmul.mubr.msk.f32.vlgmr.msra.gmra.mrb[0].mxu0 %vm186_vm0, %v183_v3 }
  0xe7   : > { %v256_v4 = vpop.f32.mrb[0].mxu0 }
  0xe8   : > { %v261_v5 = vmax.f32 %v256_v4, 0.0  ;;  %v258_v6 = vpop.f32.mrb[1].mxu0 }
  0xe9   : > { %v262_v7 = vmax.f32 %v258_v6, 0.0 }
  0xea   : > { %263 = vst [vmem:[%s181_s21] sm:$0xff] %v261_v5 }
  0xeb   : > { %264 = vst [vmem:[%s181_s21 + $0x8] sm:$0xff] %v262_v7 }
  0xec PF: > { %s12_s11 = sadd.s32 1, %s413_s11   ;;  %s467_s9 = smov %s409_s10 }
  0xed   : > { %p9_p5 = scmp.ge.s32.totalorder %s12_s11, 4   ;;  %s468_s10 = smov %s470_s12 }
  0xef   :  { %11 = sbr.rel (!%p9_p5) target bundleno = 2 (0x2), region = 58 }

</bundles_post_ra>
